<compile_context>
chip_gen: v6e
topology: v6e:2x2x1
jax: 0.10.0
libtpu: 0.0.40
codegen_flags: <defaults>
</compile_context>

<pallas_src>
import jax
import jax.numpy as jnp
from jax.experimental import pallas as pl
from jax.experimental.pallas import tpu as pltpu


def _round_up(v, m):
    return (v + m - 1) // m * m


_VMEM_BUDGET = 28 * 1024 * 1024   # plan target: fits v7x's 32 MiB scoped / 64 MiB physical
_VMEM_LIMIT = 32 * 1024 * 1024    # explicit scoped-VMEM limit (raises v5e's 16 MiB default)


def _choose_tm(M, K, Ep, out_itemsize):
    """Pick the M tile: as large as fits the VMEM plan, >= 2 tiles when M allows."""
    # Resident weight (worst-case double-buffered) + bias buffers.
    fixed = 2 * K * Ep * 2 + 2 * Ep * 4
    # Per-M-row cost of the streamed tiles: double-buffered bf16 x + out.
    per_row = 2 * K * 2 + 2 * Ep * out_itemsize
    cap = 2048
    while cap > 8 and fixed + cap * per_row > _VMEM_BUDGET:
        cap //= 2
    m8 = _round_up(M, 8)
    tm = min(cap, m8)
    # v7x megacore: ensure the parallel M axis has at least 2 tiles when M allows,
    # so both TensorCores get work (no-op on single-TC v5e/v6e).
    if tm >= m8 and m8 >= 16:
        tm = _round_up((m8 + 1) // 2, 8)
    return tm


def _patch_embed_kernel(x_ref, w_ref, b_ref, o_ref):
    # x_ref: [tm, K] bf16 (streamed over M), w_ref: [K, Ep] bf16 (VMEM-resident),
    # b_ref: [1, Ep] f32 (VMEM-resident), o_ref: [tm, Ep].
    # One MXU matmul with f32 accumulation, f32 bias add, single cast, single
    # lane-dense (128-aligned) store.
    acc = jnp.dot(x_ref[...], w_ref[...], preferred_element_type=jnp.float32)
    o_ref[...] = (acc + b_ref[...]).astype(o_ref.dtype)


def patch_embedding(x, weight, bias, *, patch_size, out_dtype=None):
    """Pallas PatchEmbedding forward.

    Args:
      x:      [B, C, H, W]   (NCHW, same as the PyTorch module)
      weight: [E, C, P, P]   (nn.Conv2d weight layout)
      bias:   [E]
      out_dtype: output dtype (default x.dtype; pass jnp.bfloat16 to halve the
                 output HBM stream if the downstream encoder accepts bf16)
    Returns:
      [B, N, E] with N = (H // P) * (W // P)
      == Conv2d(stride=P) -> Flatten(2,3) -> permute(0,2,1)
    """
    B, C, H, W = x.shape
    E = weight.shape[0]
    P = patch_size
    assert H % P == 0 and W % P == 0, "image size must be divisible by patch size"
    Hp, Wp = H // P, W // P
    N = Hp * Wp
    K = C * P * P
    M = B * N

    out_dtype = x.dtype if out_dtype is None else out_dtype
    out_itemsize = jnp.dtype(out_dtype).itemsize

    # Alignment only where the hardware needs it:
    #   Ep: multiple of 128 lanes  -> full-width, unmasked vst on all generations.
    #   tm: multiple of 8 sublanes -> valid block; sized by the VMEM plan.
    Ep = _round_up(E, 128)
    tm = _choose_tm(M, K, Ep, out_itemsize)
    Mp = _round_up(M, tm)

    # --- patch extraction glue (explicit pre-pass; see TODO at top of file) ---
    # Channel-major (c, ph, pw) flattening matches nn.Conv2d's [E, C, P, P] weights.
    xp = x.reshape(B, C, Hp, P, Wp, P)
    xp = jnp.transpose(xp, (0, 2, 4, 1, 3, 5))            # [B, Hp, Wp, C, P, P]
    x_mat = xp.reshape(M, K).astype(jnp.bfloat16)         # [M, K]  bf16
    w_mat = weight.reshape(E, K).T.astype(jnp.bfloat16)   # [K, E]  bf16
    b_mat = bias.astype(jnp.float32).reshape(1, E)        # [1, E]  f32

    # Pad M / E to tile multiples (lane-dense output blocks, no sub-128 tails).
    if Mp != M:
        x_mat = jnp.pad(x_mat, ((0, Mp - M), (0, 0)))
    if Ep != E:
        w_mat = jnp.pad(w_mat, ((0, 0), (0, Ep - E)))
        b_mat = jnp.pad(b_mat, ((0, 0), (0, Ep - E)))

    # Accurate traffic for the 1-D grid: x streamed once, W + bias fetched once,
    # output written once.
    cost = pl.CostEstimate(
        flops=2 * Mp * K * Ep,
        transcendentals=0,
        bytes_accessed=Mp * K * 2 + K * Ep * 2 + Ep * 4 + Mp * Ep * out_itemsize,
    )

    out = pl.pallas_call(
        _patch_embed_kernel,
        out_shape=jax.ShapeDtypeStruct((Mp, Ep), out_dtype),
        grid_spec=pltpu.PrefetchScalarGridSpec(
            num_scalar_prefetch=0,
            grid=(Mp // tm,),                                 # 1-D grid over M only
            in_specs=[
                pl.BlockSpec((tm, K), lambda i: (i, 0)),      # x: streamed over M
                pl.BlockSpec((K, Ep), lambda i: (0, 0)),      # W: pinned in VMEM
                pl.BlockSpec((1, Ep), lambda i: (0, 0)),      # bias: pinned in VMEM
            ],
            out_specs=pl.BlockSpec((tm, Ep), lambda i: (i, 0)),
        ),
        compiler_params=pltpu.CompilerParams(
            # Independent M tiles -> shard across v7x's 2 TensorCores.
            dimension_semantics=("parallel",),
            vmem_limit_bytes=_VMEM_LIMIT,
        ),
        cost_estimate=cost,
    )(x_mat, w_mat, b_mat)

    return out[:M, :E].reshape(B, N, E)


def _reference(x, weight, bias, patch_size):
    # Pure-JAX reference with matching bf16-operand / f32-accumulate numerics:
    # strided conv (NCHW, OIHW) -> flatten -> permute (== the PyTorch module).
    y = jax.lax.conv_general_dilated(
        x.astype(jnp.bfloat16), weight.astype(jnp.bfloat16),
        window_strides=(patch_size, patch_size),
        padding="VALID",
        dimension_numbers=("NCHW", "OIHW", "NCHW"),
        preferred_element_type=jnp.float32,
    )
    y = y + bias.reshape(1, -1, 1, 1).astype(jnp.float32)
    B, E, Hp, Wp = y.shape
    return jnp.transpose(y.reshape(B, E, Hp * Wp), (0, 2, 1))


if __name__ == "__main__":
    # Small shapes consistent with the module's forward:
    B, C, H, W = 2, 4, 16, 16
    P = 8            # patch_size
    E = 32           # embedding_dim
    # => N = (16/8)^2 = 4 patches per image, K = C*P*P = 256, M = B*N = 8

    key = jax.random.PRNGKey(0)
    kx, kw, kb = jax.random.split(key, 3)
    x = jax.random.normal(kx, (B, C, H, W), dtype=jnp.float32)
    # Deterministic parameter init (shapes match nn.Conv2d(C, E, P, stride=P)).
    weight = jax.random.normal(kw, (E, C, P, P), dtype=jnp.float32) * 0.02
    bias = jax.random.normal(kb, (E,), dtype=jnp.float32) * 0.02

    pe = jax.jit(patch_embedding, static_argnames=("patch_size", "out_dtype"))
    out = pe(x, weight, bias, patch_size=P)
    out = jax.block_until_ready(out)

    ref = _reference(x, weight, bias, P)
    assert out.shape == (B, (H // P) * (W // P), E), out.shape
    assert jnp.allclose(out, ref, atol=1e-2, rtol=1e-2), "mismatch vs reference"

    print("KERNEL_OK")
</pallas_src>

<mosaic_0001>
module attributes {stable_mosaic.version = 11 : i64} {
  func.func @_patch_embed_kernel(%arg0: i32, %arg1: memref<8x256xbf16, #tpu.memory_space<vmem>>, %arg2: memref<256x128xbf16, #tpu.memory_space<vmem>>, %arg3: memref<1x128xf32, #tpu.memory_space<vmem>>, %arg4: memref<8x128xf32, #tpu.memory_space<vmem>>) attributes {dimension_semantics = [#tpu.dimension_semantics<parallel>], iteration_bounds = array<i64: 1>, scalar_prefetch = 0 : i64, scratch_operands = 0 : i64, tpu.core_type = #tpu.core_type<tc>, window_params = [{transform_indices = @transform_0, window_bounds = array<i64: 8, 256>}, {pipeline_mode = #tpu.pipeline_mode<synchronous>, transform_indices = @transform_1, window_bounds = array<i64: 256, 128>}, {pipeline_mode = #tpu.pipeline_mode<synchronous>, transform_indices = @transform_2, window_bounds = array<i64: 1, 128>}, {transform_indices = @transform_3, window_bounds = array<i64: 8, 128>}]} {
    %c0 = arith.constant 0 : index
    %c0_0 = arith.constant 0 : index
    %0 = vector.load %arg1[%c0, %c0_0] : memref<8x256xbf16, #tpu.memory_space<vmem>>, vector<8x256xbf16>
    %c0_1 = arith.constant 0 : index
    %c0_2 = arith.constant 0 : index
    %1 = vector.load %arg2[%c0_1, %c0_2] : memref<256x128xbf16, #tpu.memory_space<vmem>>, vector<256x128xbf16>
    %cst = arith.constant dense<0.000000e+00> : vector<8x128xf32>
    %2 = tpu.matmul %0, %1, %cst {dimension_numbers = #tpu.dot_dimension_numbers<[1], [0], [0], [1], [0, 0, 1, 1], [], []>} : vector<8x256xbf16>, vector<256x128xbf16>, vector<8x128xf32> -> vector<8x128xf32>
    %c0_3 = arith.constant 0 : index
    %c0_4 = arith.constant 0 : index
    %3 = vector.load %arg3[%c0_3, %c0_4] : memref<1x128xf32, #tpu.memory_space<vmem>>, vector<1x128xf32>
    %4 = vector.broadcast %3 : vector<1x128xf32> to vector<8x128xf32>
    %5 = arith.addf %2, %4 : vector<8x128xf32>
    %c0_5 = arith.constant 0 : index
    %c0_6 = arith.constant 0 : index
    %6 = vector.load %arg4[%c0_5, %c0_6] : memref<8x128xf32, #tpu.memory_space<vmem>>, vector<8x128xf32>
    tpu.vector_store %arg4[%c0_5, %c0_6], %5 {strides = array<i32>} : memref<8x128xf32, #tpu.memory_space<vmem>>, vector<8x128xf32>,
    return
  }
  func.func @transform_0(%arg0: i32) -> (i32, i32) {
    %c0_i32 = arith.constant 0 : i32
    %c0_i32_0 = arith.constant 0 : i32
    return %arg0, %c0_i32 : i32, i32
  }
  func.func @transform_1(%arg0: i32) -> (i32, i32) {
    %c0_i32 = arith.constant 0 : i32
    %c0_i32_0 = arith.constant 0 : i32
    %c0_i32_1 = arith.constant 0 : i32
    return %c0_i32, %c0_i32_0 : i32, i32
  }
  func.func @transform_2(%arg0: i32) -> (i32, i32) {
    %c0_i32 = arith.constant 0 : i32
    %c0_i32_0 = arith.constant 0 : i32
    %c0_i32_1 = arith.constant 0 : i32
    return %c0_i32, %c0_i32_0 : i32, i32
  }
  func.func @transform_3(%arg0: i32) -> (i32, i32) {
    %c0_i32 = arith.constant 0 : i32
    %c0_i32_0 = arith.constant 0 : i32
    return %arg0, %c0_i32 : i32, i32
  }
}

</mosaic_0001>

<bundles_post_ra>
// kernel: patch_embedding.1
= control target key start
LH: loop header
LB: loop body
LE: loop exit
PB: predicated region body
PF: predicated region fallthrough
CT: control target
= control target key end

     0   :  { %s374_s0 = inlined_call_operand.vmem [shape: bf16[8,256], index: 0, kind: input, shape index: {}]   ;;  %s375_s1 = inlined_call_operand.vmem [shape: bf16[256,128], index: 1, kind: input, shape index: {}]   ;;  %s376_s2 = inlined_call_operand.vmem [shape: f32[1,128], index: 2, kind: input, shape index: {}]   ;;  %s377_s3 = inlined_call_operand.hbm [shape: f32[8,128], index: 3, kind: output, shape index: {}]  }
   0x1   :  { %v256_v0 = vld [vmem:[%s375_s1 + $0x78] sm:$0xff]   ;;  %v258_v2 = vld [vmem:[%s375_s1 + $0x70] sm:$0xff]   ;;  %v260_v4 = vld [vmem:[%s375_s1 + $0x68] sm:$0xff]  }
   0x2   :  { %v257_v1 = vld [vmem:[%s375_s1 + $0x38] sm:$0xff]   ;;  %233 = vmatprep.subr.bf16.mxu0 %v256_v0  ;;  %v259_v3 = vld [vmem:[%s375_s1 + $0x30] sm:$0xff]   ;;  %v261_v5 = vld [vmem:[%s375_s1 + $0x28] sm:$0xff]  }
   0x3   :  { %234 = vmatpush3.bf16.msra.mxu0 %v257_v1  ;;  %v262_v6 = vld [vmem:[%s375_s1 + $0x60] sm:$0xff]   ;;  %v264_v8 = vld [vmem:[%s375_s1 + $0x58] sm:$0xff]   ;;  %v266_v10 = vld [vmem:[%s375_s1 + $0x50] sm:$0xff]  }
   0x4   :  { %235 = vmatprep.subr.bf16.mxu0 %v258_v2  ;;  %v263_v7 = vld [vmem:[%s375_s1 + $0x20] sm:$0xff]   ;;  %v265_v9 = vld [vmem:[%s375_s1 + $0x18] sm:$0xff]  }
   0x5   :  { %v16_v11 = vld [vmem:[%s374_s0] sm:$0xff] }
   0x7   :  { %236 = vmatpush3.bf16.msra.mxu0 %v259_v3 }
   0x8   :  { %237 = vmatprep.subr.bf16.mxu0 %v260_v4 }
   0xb   :  { %238 = vmatpush3.bf16.msra.mxu0 %v261_v5 }
   0xc   :  { %239 = vmatprep.subr.bf16.mxu0 %v262_v6 }
   0xf   :  { %240 = vmatpush3.bf16.msra.mxu0 %v263_v7 }
  0x10   :  { %241 = vmatprep.subr.bf16.mxu0 %v264_v8 }
  0x11   :  { %8 = vsyncpa [#allocation3], 0  ;;  %v216_v12 = vcombine.high %v16_v11, %v16_v11  ;;  %v267_v13 = vld [vmem:[%s375_s1 + $0x10] sm:$0xff]   ;;  %v268_v14 = vld [vmem:[%s375_s1 + $0x48] sm:$0xff]   ;;  %v215_v18 = vcombine.low %v16_v11, %v16_v11  ;;  %s296_s20 = smov [#allocation2]  }
  0x12   :  { %v269_v15 = vld [vmem:[%s375_s1 + $0x8] sm:$0xff]   ;;  %v270_v16 = vld [vmem:[%s375_s1 + $0x40] sm:$0xff]   ;;  %s206_s21 = sshll.u32 %s296_s20, 4  ;;  %s207_s21 = int_to_ptr.vmem [resolvable:$true] %s206_s21 }
  0x13   :  { %242 = vmatpush3.bf16.msra.mxu0 %v265_v9  ;;  %191 = vmatprep.mubr.bf16.mxu0 %v216_v12  ;;  %v271_v17 = vld [vmem:[%s375_s1] sm:$0xff]   ;;  %s274_s22 = scalar_lea.vmem %s207_s21, 128  ;;  %p279_p1 = scmp.lt.s32.totalorder %s207_s21, %s207_s21 }
  0x14   :  { %243 = vmatprep.subr.bf16.mxu0 %v266_v10  ;;  %v214_v21 = vld [vmem:[%s376_s2] ss:$0 sm:$0xff]  ;;  %p275_p0 = scmp.ne.s32.totalorder %s207_s21, %s274_s22  ;;  %p280_p2 = scmp.lt.s32.totalorder %s274_s22, %s274_s22 }
  0x16   :  { %p281_p3 = por %p280_p2, %p279_p1 }
  0x17   :  { %244 = vmatpush3.bf16.msra.mxu0 %v267_v13 }
  0x18   :  { %245 = vmatprep.subr.bf16.mxu0 %v268_v14  ;;  %p282_p4 = pnand %p281_p3, %p275_p0 }
  0x1b   :  { %246 = vmatpush3.bf16.msra.mxu0 %v269_v15 }
  0x1c   :  { %247 = vmatprep.subr.bf16.mxu0 %v270_v16 }
  0x1f   :  { %248 = vmatpush3.bf16.msra.mxu0 %v271_v17 }
  0x22   :  { %192 = vmatmul.mubr.bf16.vlgmr.msra.gmra.mxu0 %v215_v18 }
  0xe2   :  { %v249_v19 = vpop.f32.mrf.mxu0 }
  0xe4   :  { %v250_v20 = vpop.f32.mrf.mxu0 }
  0xe5   :  { %v251_v22 = vadd.f32 %v250_v20, %v249_v19 }
  0xe6   :  { %v252_v23 = vpop.f32.mrf.mxu0 }
  0xe7   :  { %v194_v24 = vadd.f32 %v251_v22, %v214_v21 }
  0xe8   :  { %v253_v25 = vpop.f32.mrf.mxu0 }
  0xe9   :  { %199 = vst [vmem:[#allocation2] sm:$0xff] %v194_v24 }
  0xea   :  { %285 = shalt.err (!%p282_p4)
}
  0xeb   :  { %209 = dma.vmem_to_hbm [thread:$0]  %s207_s21, 128, %s377_s3, [#allocation3]  }
  0xec   :  { %294 = dma.done.wait [#allocation3], 128  }
  0xed   :  { %295 = vsyncadd [#allocation3], 4294967168 }
  0xee   :  { %213 = vsyncpa [#allocation3], 1 }

</bundles_post_ra>
